<compile_context>
chip_gen: v5e
topology: v5e:2x2
jax: 0.10.0
libtpu: 0.0.40
codegen_flags: <defaults>
</compile_context>

<pallas_src>
import jax
import jax.numpy as jnp
from jax.experimental import pallas as pl
from jax.experimental.pallas import tpu as pltpu

_LANES = 128
_VMEM_LIMIT = 32 * 1024 * 1024  # > v5e's 16 MiB default, == v6e/v7x default


def _round_up(x: int, m: int) -> int:
    return ((x + m - 1) // m) * m


def _has_megacore() -> bool:
    """Best-effort: does this chip expose 2 TensorCores per device?"""
    try:
        kind = jax.devices()[0].device_kind.lower()
    except Exception:
        return False
    # v4 (megacore) and v7x have 2 TCs/chip; v5e/v5p-lite/v6e have 1.
    return ("v4" in kind) or ("v7" in kind) or ("7x" in kind)


def _linq_math(z, a):
    """LinQ on f32 values; `a` is an f32 scalar (traced or constant)."""
    upper = 2.0 - 2.0 * a
    lower = -upper  # == -2 + 2a
    # Upper / lower quadratic branches differ only in the +/-1 constant;
    # z <= lower picks -1 last, matching the PyTorch assignment order.
    quad = z * z + (a - 2.0) * z + jnp.where(z <= lower, -1.0, 1.0)
    mid = 0.25 * z * (4.0 - jnp.abs(z))
    return jnp.where((z > lower) & (z < upper), mid, quad)


def _make_const_kernel(a_const: float):
    a = float(a_const)

    def kernel(x_ref, o_ref):
        z = x_ref[...].astype(jnp.float32)
        o_ref[...] = _linq_math(z, a).astype(o_ref.dtype)

    return kernel


def _prefetch_kernel(a_ref, x_ref, o_ref):
    a = a_ref[0].astype(jnp.float32)
    z = x_ref[...].astype(jnp.float32)
    o_ref[...] = _linq_math(z, a).astype(o_ref.dtype)


def linq(x: jax.Array, a=1.0) -> jax.Array:
    """Apply LinQ elementwise to an array of arbitrary shape."""
    orig_shape = x.shape
    dtype = x.dtype
    n = x.size
    if n == 0:
        return x

    itemsize = jnp.dtype(dtype).itemsize
    pack = max(1, 4 // max(1, itemsize))
    sub = 8 * pack                 # sublane multiple: 8 f32, 16 bf16, 32 int8
    target_rows = 8192 * pack      # ~4 MiB block regardless of dtype

    rows = pl.cdiv(n, _LANES)

    # Grid-step count: ~4 MiB per step; on megacore chips keep it even (and
    # >= 2 for anything over ~1 MiB) so both TensorCores get equal work.
    g = pl.cdiv(rows, target_rows)
    if _has_megacore() and rows * _LANES * itemsize > (1 << 20):
        g = max(g, 2)
        if g % 2:
            g += 1
    tr = _round_up(pl.cdiv(rows, g), sub)
    g = pl.cdiv(rows, tr)  # Pallas masks the partial final block.

    flat = jnp.ravel(x)
    ragged = (n % _LANES) != 0
    if ragged:
        # Only the sub-128-element tail is padded (minimal copy); the common
        # 128-multiple case never touches a pad or slice.
        flat = jnp.pad(flat, (0, rows * _LANES - n))
    x2d = flat.reshape(rows, _LANES)

    compiler_params = pltpu.CompilerParams(
        dimension_semantics=("parallel",),
        vmem_limit_bytes=_VMEM_LIMIT,
    )
    out_shape = jax.ShapeDtypeStruct((rows, _LANES), dtype)

    if isinstance(a, (int, float)):
        # Compile-time `a`: bake it into the kernel, no SMEM traffic.
        out2d = pl.pallas_call(
            _make_const_kernel(a),
            out_shape=out_shape,
            grid=(g,),
            in_specs=[pl.BlockSpec((tr, _LANES), lambda i: (i, 0))],
            out_specs=pl.BlockSpec((tr, _LANES), lambda i: (i, 0)),
            compiler_params=compiler_params,
        )(x2d)
    else:
        # Traced / learnable `a`: scalar prefetch into SMEM.
        a_arr = jnp.asarray(a, dtype=jnp.float32).reshape((1,))
        out2d = pl.pallas_call(
            _prefetch_kernel,
            out_shape=out_shape,
            grid_spec=pltpu.PrefetchScalarGridSpec(
                num_scalar_prefetch=1,
                grid=(g,),
                in_specs=[pl.BlockSpec((tr, _LANES), lambda i, a_ref: (i, 0))],
                out_specs=pl.BlockSpec((tr, _LANES), lambda i, a_ref: (i, 0)),
            ),
            compiler_params=compiler_params,
        )(a_arr, x2d)

    if ragged:
        return out2d.reshape(-1)[:n].reshape(orig_shape)
    return out2d.reshape(orig_shape)


def _linq_ref(z: jax.Array, a: float = 1.0) -> jax.Array:
    """Pure-JAX reference replicating the PyTorch assignment order."""
    zf = z.astype(jnp.float32)
    af = jnp.float32(a)
    upper = 2.0 - 2.0 * af
    lower = -2.0 + 2.0 * af
    upper_val = af * zf + 1.0 - 2.0 * zf + zf * zf
    lower_val = af * zf - 1.0 - 2.0 * zf + zf * zf
    mid_val = 0.25 * zf * (4.0 - jnp.abs(zf))
    res = jnp.where(zf >= upper, upper_val, jnp.zeros_like(zf))
    res = jnp.where((zf > lower) & (zf < upper), mid_val, res)
    res = jnp.where(zf <= lower, lower_val, res)
    return res.astype(z.dtype)


if __name__ == "__main__":
    key = jax.random.PRNGKey(0)

    # NCHW-like input (2, 4, 16, 16): n = 2048 = 16 * 128 -> lane-dense,
    # no-pad fast path. Scaled so all regions are exercised.
    x = jax.random.normal(key, (2, 4, 16, 16), dtype=jnp.float32) * 2.0

    # Default a = 1.0 (degenerate middle region; z == 0 -> -1).
    out = jax.block_until_ready(linq(x, a=1.0))
    assert out.shape == x.shape and out.dtype == x.dtype
    assert jnp.allclose(out, _linq_ref(x, a=1.0), atol=1e-5, rtol=1e-5)

    # a = 0.5 exercises all three branches (constant-a fast path).
    out = jax.block_until_ready(linq(x, a=0.5))
    assert jnp.allclose(out, _linq_ref(x, a=0.5), atol=1e-5, rtol=1e-5)

    # a > 1 (inverted thresholds, empty middle region).
    out = jax.block_until_ready(linq(x, a=1.5))
    assert jnp.allclose(out, _linq_ref(x, a=1.5), atol=1e-5, rtol=1e-5)

    # Learnable/traced `a` -> scalar-prefetch path.
    a_param = jnp.asarray([0.75], dtype=jnp.float32)
    out = jax.block_until_ready(linq(x, a=a_param))
    assert jnp.allclose(out, _linq_ref(x, a=0.75), atol=1e-5, rtol=1e-5)

    # Ragged (non-128-multiple) shape -> minimal tail-pad path.
    y = jax.random.normal(jax.random.PRNGKey(1), (3, 5, 7), dtype=jnp.float32) * 2.0
    out_y = jax.block_until_ready(linq(y, a=0.5))
    assert out_y.shape == y.shape
    assert jnp.allclose(out_y, _linq_ref(y, a=0.5), atol=1e-5, rtol=1e-5)

    print("KERNEL_OK")
</pallas_src>

<mosaic_0001>
module attributes {stable_mosaic.version = 11 : i64} {
  func.func @kernel(%arg0: i32, %arg1: memref<16x128xf32, #tpu.memory_space<vmem>>, %arg2: memref<16x128xf32, #tpu.memory_space<vmem>>) attributes {dimension_semantics = [#tpu.dimension_semantics<parallel>], iteration_bounds = array<i64: 1>, scalar_prefetch = 0 : i64, scratch_operands = 0 : i64, tpu.core_type = #tpu.core_type<tc>, window_params = [{transform_indices = @transform_0, window_bounds = array<i64: 16, 128>}, {transform_indices = @transform_1, window_bounds = array<i64: 16, 128>}]} {
    %c0 = arith.constant 0 : index
    %c0_0 = arith.constant 0 : index
    %0 = vector.load %arg1[%c0, %c0_0] : memref<16x128xf32, #tpu.memory_space<vmem>>, vector<16x128xf32>
    %1 = arith.mulf %0, %0 : vector<16x128xf32>
    %cst = arith.constant -1.000000e+00 : f32
    %2 = vector.broadcast %cst : f32 to vector<16x128xf32>
    %3 = arith.mulf %2, %0 : vector<16x128xf32>
    %4 = arith.addf %1, %3 : vector<16x128xf32>
    %cst_1 = arith.constant -0.000000e+00 : f32
    %5 = vector.broadcast %cst_1 : f32 to vector<16x128xf32>
    %6 = arith.cmpf ole, %0, %5 : vector<16x128xf32>
    %cst_2 = arith.constant -1.000000e+00 : f32
    %cst_3 = arith.constant 1.000000e+00 : f32
    %7 = vector.broadcast %cst_2 : f32 to vector<16x128xf32>
    %8 = vector.broadcast %cst_3 : f32 to vector<16x128xf32>
    %9 = arith.select %6, %7, %8 : vector<16x128xi1>, vector<16x128xf32>
    %10 = arith.addf %4, %9 : vector<16x128xf32>
    %cst_4 = arith.constant 2.500000e-01 : f32
    %11 = vector.broadcast %cst_4 : f32 to vector<16x128xf32>
    %12 = arith.mulf %11, %0 : vector<16x128xf32>
    %13 = math.absf %0 : vector<16x128xf32>
    %cst_5 = arith.constant 4.000000e+00 : f32
    %14 = vector.broadcast %cst_5 : f32 to vector<16x128xf32>
    %15 = arith.subf %14, %13 : vector<16x128xf32>
    %16 = arith.mulf %12, %15 : vector<16x128xf32>
    %cst_6 = arith.constant -0.000000e+00 : f32
    %17 = vector.broadcast %cst_6 : f32 to vector<16x128xf32>
    %18 = arith.cmpf ogt, %0, %17 : vector<16x128xf32>
    %cst_7 = arith.constant 0.000000e+00 : f32
    %19 = vector.broadcast %cst_7 : f32 to vector<16x128xf32>
    %20 = arith.cmpf olt, %0, %19 : vector<16x128xf32>
    %21 = arith.andi %18, %20 : vector<16x128xi1>
    %22 = arith.select %21, %16, %10 : vector<16x128xi1>, vector<16x128xf32>
    %c0_8 = arith.constant 0 : index
    %c0_9 = arith.constant 0 : index
    %23 = vector.load %arg2[%c0_8, %c0_9] : memref<16x128xf32, #tpu.memory_space<vmem>>, vector<16x128xf32>
    tpu.vector_store %arg2[%c0_8, %c0_9], %22 {strides = array<i32>} : memref<16x128xf32, #tpu.memory_space<vmem>>, vector<16x128xf32>,
    return
  }
  func.func @transform_0(%arg0: i32) -> (i32, i32) {
    %c0_i32 = arith.constant 0 : i32
    %c0_i32_0 = arith.constant 0 : i32
    return %arg0, %c0_i32 : i32, i32
  }
  func.func @transform_1(%arg0: i32) -> (i32, i32) {
    %c0_i32 = arith.constant 0 : i32
    %c0_i32_0 = arith.constant 0 : i32
    return %arg0, %c0_i32 : i32, i32
  }
}

</mosaic_0001>

<bundles_post_ra>
// kernel: tpu_custom_call.1
= control target key start
LH: loop header
LB: loop body
LE: loop exit
PB: predicated region body
PF: predicated region fallthrough
CT: control target
= control target key end

     0   :  { %6 = vsyncpa [#allocation3], 0  ;;  %s160_s0 = inlined_call_operand.hbm [shape: f32[16,128], index: 0, kind: input, shape index: {}]   ;;  %s161_s1 = inlined_call_operand.hbm [shape: f32[16,128], index: 1, kind: output, shape index: {}]  }
   0x1   :  { %7 = vsyncpa [#allocation4], 0  ;;  %s12_s8 = sshll.u32 %s160_s0, 4  ;;  %s133_s9 = smov [#allocation2]   ;;  %s13_s8 = int_to_ptr.hbm [resolvable:$true] %s12_s8 }
   0x2   :  { %s14_s10 = sshll.u32 %s133_s9, 4  ;;  %s134_s11 = smov 128   ;;  %s15_s10 = int_to_ptr.vmem [resolvable:$true] %s14_s10 }
   0x3   :  { %s135_s12 = smov 8  }
   0x4   :  { %20 = dma.hbm_to_vmem [thread:$0]  %s13_s8, 256, %s15_s10, [#allocation3], %s134_s11, %s134_s11, %s135_s12  }
   0x5   :  { %129 = dma.done.wait [#allocation3], 256  }
   0x6   :  { %130 = vsyncadd [#allocation3], 4294967040  ;;  %v25_v0 = vld [vmem:[#allocation2] sm:$0xff]  ;;  %v26_v1 = vld [vmem:[#allocation2 + $0x8] sm:$0xff]  ;;  %v136_v5 = vmov 1.0   ;;  %s137_s0 = smov [#allocation5]  }
   0x7   :  { %v27_v2 = vmul.f32 %v25_v0, %v25_v0  ;;  %v29_v3 = vmul.f32 -1.0, %v25_v0  ;;  %vm33_vm0 = vcmp.le.f32.partialorder %v25_v0, -0.0  ;;  %v39_v4 = vmul.f32 0.25, %v25_v0  ;;  %s61_s13 = sshll.u32 %s137_s0, 4  ;;  %s63_s16 = sshll.u32 %s161_s1, 4  ;;  %s62_s13 = int_to_ptr.vmem [resolvable:$true] %s61_s13  ;;  %s64_s16 = int_to_ptr.hbm [resolvable:$true] %s63_s16 }
   0x8   :  { %v35_v6 = vsel %vm33_vm0, -1.0, %v136_v5  ;;  %v41_v7 = vand.u32 2147483647, %v25_v0  ;;  %vm47_vm1 = vcmp.gt.f32.partialorder %v25_v0, -0.0  ;;  %vm49_vm2 = vcmp.lt.f32.partialorder %v25_v0, 0.0 }
   0x9   :  { %v31_v8 = vadd.f32 %v29_v3, %v27_v2  ;;  %v28_v9 = vmul.f32 %v26_v1, %v26_v1  ;;  %v30_v10 = vmul.f32 -1.0, %v26_v1  ;;  %vm34_vm3 = vcmp.le.f32.partialorder %v26_v1, -0.0  ;;  %vm51_vm4 = vmand %vm47_vm1, %vm49_vm2 }
   0xa   :  { %v43_v11 = vsub.f32 4.0, %v41_v7  ;;  %v36_v12 = vsel %vm34_vm3, -1.0, %v136_v5  ;;  %v40_v13 = vmul.f32 0.25, %v26_v1  ;;  %v42_v14 = vand.u32 2147483647, %v26_v1 }
   0xb   :  { %v37_v15 = vadd.f32 %v35_v6, %v31_v8  ;;  %v32_v16 = vadd.f32 %v30_v10, %v28_v9  ;;  %vm48_vm5 = vcmp.gt.f32.partialorder %v26_v1, -0.0  ;;  %vm50_vm6 = vcmp.lt.f32.partialorder %v26_v1, 0.0 }
   0xc   :  { %v45_v17 = vmul.f32 %v43_v11, %v39_v4  ;;  %v44_v18 = vsub.f32 4.0, %v42_v14  ;;  %vm52_vm7 = vmand %vm48_vm5, %vm50_vm6 }
   0xd   :  { %v38_v19 = vadd.f32 %v36_v12, %v32_v16 }
   0xe   :  { %v53_v20 = vsel %vm51_vm4, %v45_v17, %v37_v15  ;;  %v46_v21 = vmul.f32 %v44_v18, %v40_v13 }
   0xf   :  { %55 = vst [vmem:[#allocation5] sm:$0xff] %v53_v20 }
  0x10   :  { %v54_v22 = vsel %vm52_vm7, %v46_v21, %v38_v19 }
  0x11   :  { %56 = vst [vmem:[#allocation5 + $0x8] sm:$0xff] %v54_v22 }
  0x12   :  { %69 = dma.vmem_to_hbm [thread:$0]  %s62_s13, 256, %s64_s16, [#allocation4], %s134_s11, %s134_s11, %s135_s12  }
  0x13   :  { %131 = dma.done.wait [#allocation4], 256  }
  0x14   :  { %132 = vsyncadd [#allocation4], 4294967040 }
  0x15   :  { %74 = vsyncpa [#allocation3], 1 }
  0x16   :  { %75 = vsyncpa [#allocation4], 1 }

</bundles_post_ra>
